<compile_context>
chip_gen: v5e
topology: v5e:2x2
jax: 0.10.0
libtpu: 0.0.40
codegen_flags: <defaults>
</compile_context>

<pallas_src>
import functools

import jax
import jax.numpy as jnp
from jax import lax
from jax.experimental import pallas as pl
from jax.experimental.pallas import tpu as pltpu


# ----------------------------- Pallas kernel ------------------------------ #

def _combined_angle_kernel(
    x_ref,                      # (TB, L)   bf16  landmark tile
    w_enc_ref, b_enc_ref,       # (L, H) bf16, (1, H) f32     encoder trunk
    w_hm_ref, b_hm_ref,         # (H, 3A) bf16, (1, 3A) f32   heads x angle-layer-1 (fused)
    w_a2t_ref, b_a2t_ref,       # (8, 3A) bf16, (8, 1) f32    angle layer-2, transposed+padded
    out_ref,                    # (8, TB)  f32  rows 0..2 = [yaw, pitch, roll]
):
    x = x_ref[...]                                                     # bf16

    # encoder trunk: h = relu(x @ W_enc + b_enc)   (TB, H) f32
    h = jnp.dot(x, w_enc_ref[...], preferred_element_type=jnp.float32)
    h = jnp.maximum(h + b_enc_ref[...], 0.0)

    # fused heads + angle layer-1: a = relu(h @ W_hm + b_hm)   (TB, 3A) f32
    a = jnp.dot(h.astype(jnp.bfloat16), w_hm_ref[...],
                preferred_element_type=jnp.float32)
    a = jnp.maximum(a + b_hm_ref[...], 0.0)

    # angle layer-2, produced directly in lane-dense (8, TB) layout:
    #   out_t = W_a2^T @ a^T  ==  dot_general(lhs=(8,3A), rhs=(TB,3A), contract last dims)
    o_t = lax.dot_general(
        w_a2t_ref[...], a.astype(jnp.bfloat16),
        dimension_numbers=(((1,), (1,)), ((), ())),
        preferred_element_type=jnp.float32)                            # (8, TB)
    out_ref[...] = o_t + b_a2t_ref[...]


# ------------------------------ Wrapper ----------------------------------- #

def _round_up(v, m):
    return -(-v // m) * m


@functools.partial(jax.jit, static_argnames=("tb",))
def combined_angle_prediction(x, packed, tb=4096):
    """Fused forward pass. Returns (yaw, pitch, roll), each (B, 1) float32."""
    B, L = x.shape
    H = packed["w_enc"].shape[1]
    A3 = packed["w_hm"].shape[1]

    x = x.astype(jnp.bfloat16)

    # Batch tile: full-extent block for small B (satisfies the (8,128) rule via
    # full-array dims); otherwise a multiple of 128 (lane-dense output blocks)
    # sized for >= 2 grid steps so v7x's second TensorCore gets work.
    if B < 256:
        TB = B
    else:
        TB = max(128, min(tb, _round_up(pl.cdiv(B, 2), 128)))
    grid = (pl.cdiv(B, TB),)        # ragged last block is clipped by Pallas; no jnp.pad

    def const_spec(shape):
        # Same block every grid step -> weights stay VMEM-resident.
        return pl.BlockSpec(shape, lambda i: (0, 0))

    out = pl.pallas_call(
        _combined_angle_kernel,
        out_shape=jax.ShapeDtypeStruct((8, B), jnp.float32),
        grid=grid,
        in_specs=[
            pl.BlockSpec((TB, L), lambda i: (i, 0)),     # x: tiled over batch
            const_spec((L, H)),  const_spec((1, H)),
            const_spec((H, A3)), const_spec((1, A3)),
            const_spec((8, A3)), const_spec((8, 1)),
        ],
        out_specs=pl.BlockSpec((8, TB), lambda i: (0, i)),   # lane-dense output
        compiler_params=pltpu.CompilerParams(
            dimension_semantics=("parallel",)),
    )(
        x,
        packed["w_enc"], packed["b_enc"],
        packed["w_hm"], packed["b_hm"],
        packed["w_a2t"], packed["b_a2t"],
    )

    yaw = out[0, :][:, None]
    pitch = out[1, :][:, None]
    roll = out[2, :][:, None]
    return yaw, pitch, roll


# ---------------------- Deterministic parameter init ---------------------- #

def init_params(key, L, H, D, A):
    """Per-sub-module parameters, PyTorch-Linear-like init, weights as (in, out)."""
    def lin(k, fan_in, fan_out):
        kw, kb = jax.random.split(k)
        scale = 1.0 / jnp.sqrt(jnp.float32(fan_in))
        w = jax.random.uniform(kw, (fan_in, fan_out), jnp.float32, -scale, scale)
        b = jax.random.uniform(kb, (1, fan_out), jnp.float32, -scale, scale)
        return w, b

    keys = jax.random.split(key, 10)
    p = {}
    p["w_enc"], p["b_enc"] = lin(keys[0], L, H)
    p["w_hy"], p["b_hy"] = lin(keys[1], H, D)
    p["w_hp"], p["b_hp"] = lin(keys[2], H, D)
    p["w_hr"], p["b_hr"] = lin(keys[3], H, D)
    p["w_y1"], p["b_y1"] = lin(keys[4], D, A)
    p["w_y2"], p["b_y2"] = lin(keys[5], A, 1)
    p["w_p1"], p["b_p1"] = lin(keys[6], D, A)
    p["w_p2"], p["b_p2"] = lin(keys[7], A, 1)
    p["w_r1"], p["b_r1"] = lin(keys[8], D, A)
    p["w_r2"], p["b_r2"] = lin(keys[9], A, 1)
    return p


def _block_diag3(a, b, c):
    ra, ca = a.shape
    rb, cb = b.shape
    rc, cc = c.shape
    out = jnp.zeros((ra + rb + rc, ca + cb + cc), a.dtype)
    out = out.at[:ra, :ca].set(a)
    out = out.at[ra:ra + rb, ca:ca + cb].set(b)
    out = out.at[ra + rb:, ca + cb:].set(c)
    return out


def pack_params(p):
    """Host-side packing: 3 bf16 weight slabs + 3 f32 bias slabs for the fused kernel."""
    # 3 encoder heads concatenated along the output dimension: (H, 3D)
    w_heads = jnp.concatenate([p["w_hy"], p["w_hp"], p["w_hr"]], axis=1)
    b_heads = jnp.concatenate([p["b_hy"], p["b_hp"], p["b_hr"]], axis=1)
    # angle layer 1: block-diagonal so each head only feeds its own network  (3D, 3A)
    w_a1 = _block_diag3(p["w_y1"], p["w_p1"], p["w_r1"])
    b_a1 = jnp.concatenate([p["b_y1"], p["b_p1"], p["b_r1"]], axis=1)
    # Algebraic fusion (no nonlinearity between heads and angle layer-1):
    #   a = relu((h @ Wh + bh) @ Wa1 + ba1) = relu(h @ (Wh @ Wa1) + (bh @ Wa1 + ba1))
    w_hm = w_heads @ w_a1                       # (H, 3A)
    b_hm = b_heads @ w_a1 + b_a1                # (1, 3A)
    # angle layer 2: block-diagonal (A,1) columns -> (3A, 3); transposed and padded
    # to 8 rows so the kernel's output block is a dense (8, TB) slab.
    w_a2 = _block_diag3(p["w_y2"], p["w_p2"], p["w_r2"])                 # (3A, 3)
    b_a2 = jnp.concatenate([p["b_y2"], p["b_p2"], p["b_r2"]], axis=1)    # (1, 3)
    w_a2t = jnp.zeros((8, w_a2.shape[0]), jnp.float32).at[:3, :].set(w_a2.T)
    b_a2t = jnp.zeros((8, 1), jnp.float32).at[:3, :].set(b_a2.T)

    return {
        "w_enc": p["w_enc"].astype(jnp.bfloat16),
        "b_enc": p["b_enc"],                       # f32 (bias-add stays f32)
        "w_hm": w_hm.astype(jnp.bfloat16),
        "b_hm": b_hm,                              # f32
        "w_a2t": w_a2t.astype(jnp.bfloat16),
        "b_a2t": b_a2t,                            # f32
    }


# -------------------------- Pure-JAX reference ----------------------------- #

def reference_forward(x, p):
    """Unfused f32 reference matching the PyTorch forward structure."""
    h = jnp.maximum(x @ p["w_enc"] + p["b_enc"], 0.0)

    def head(wh, bh, w1, b1, w2, b2):
        m = (h @ wh + bh)[:, None, :]          # (B, 1, D)  encoder head output
        m = jnp.squeeze(m, axis=1)             # .squeeze(1)
        a = jnp.maximum(m @ w1 + b1, 0.0)
        return a @ w2 + b2                     # (B, 1)

    yaw = head(p["w_hy"], p["b_hy"], p["w_y1"], p["b_y1"], p["w_y2"], p["b_y2"])
    pitch = head(p["w_hp"], p["b_hp"], p["w_p1"], p["b_p1"], p["w_p2"], p["b_p2"])
    roll = head(p["w_hr"], p["b_hr"], p["w_r1"], p["b_r1"], p["w_r2"], p["b_r2"])
    return yaw, pitch, roll


# ---------------------------------- main ----------------------------------- #

if __name__ == "__main__":
    B, L, H, D, A = 2, 64, 32, 16, 32   # small shapes consistent with the forward

    key = jax.random.PRNGKey(0)
    k_x, k_p = jax.random.split(key)
    x = jax.random.normal(k_x, (B, L), jnp.float32)   # input_landmarks (B, L)
    params = init_params(k_p, L, H, D, A)
    packed = pack_params(params)

    yaw, pitch, roll = combined_angle_prediction(x, packed)
    jax.block_until_ready((yaw, pitch, roll))

    ref_yaw, ref_pitch, ref_roll = reference_forward(x, params)
    assert yaw.shape == (B, 1) and pitch.shape == (B, 1) and roll.shape == (B, 1)
    # bf16 weights/inputs -> loosened tolerance vs the f32 reference.
    assert jnp.allclose(yaw, ref_yaw, atol=5e-2, rtol=5e-2)
    assert jnp.allclose(pitch, ref_pitch, atol=5e-2, rtol=5e-2)
    assert jnp.allclose(roll, ref_roll, atol=5e-2, rtol=5e-2)

    print("KERNEL_OK")
</pallas_src>

<mosaic_0001>
module attributes {stable_mosaic.version = 11 : i64} {
  func.func @_combined_angle_kernel(%arg0: i32, %arg1: memref<2x64xbf16, #tpu.memory_space<vmem>>, %arg2: memref<64x32xbf16, #tpu.memory_space<vmem>>, %arg3: memref<1x32xf32, #tpu.memory_space<vmem>>, %arg4: memref<32x96xbf16, #tpu.memory_space<vmem>>, %arg5: memref<1x96xf32, #tpu.memory_space<vmem>>, %arg6: memref<8x96xbf16, #tpu.memory_space<vmem>>, %arg7: memref<8x1xf32, #tpu.memory_space<vmem>>, %arg8: memref<8x2xf32, #tpu.memory_space<vmem>>) attributes {dimension_semantics = [#tpu.dimension_semantics<parallel>], iteration_bounds = array<i64: 1>, scalar_prefetch = 0 : i64, scratch_operands = 0 : i64, tpu.core_type = #tpu.core_type<tc>, window_params = [{transform_indices = @transform_0, window_bounds = array<i64: 2, 64>}, {pipeline_mode = #tpu.pipeline_mode<synchronous>, transform_indices = @transform_1, window_bounds = array<i64: 64, 32>}, {pipeline_mode = #tpu.pipeline_mode<synchronous>, transform_indices = @transform_2, window_bounds = array<i64: 1, 32>}, {pipeline_mode = #tpu.pipeline_mode<synchronous>, transform_indices = @transform_3, window_bounds = array<i64: 32, 96>}, {pipeline_mode = #tpu.pipeline_mode<synchronous>, transform_indices = @transform_4, window_bounds = array<i64: 1, 96>}, {pipeline_mode = #tpu.pipeline_mode<synchronous>, transform_indices = @transform_5, window_bounds = array<i64: 8, 96>}, {pipeline_mode = #tpu.pipeline_mode<synchronous>, transform_indices = @transform_6, window_bounds = array<i64: 8, 1>}, {transform_indices = @transform_7, window_bounds = array<i64: 8, 2>}]} {
    %c0 = arith.constant 0 : index
    %c0_0 = arith.constant 0 : index
    %0 = vector.load %arg1[%c0, %c0_0] : memref<2x64xbf16, #tpu.memory_space<vmem>>, vector<2x64xbf16>
    %c0_1 = arith.constant 0 : index
    %c0_2 = arith.constant 0 : index
    %1 = vector.load %arg2[%c0_1, %c0_2] : memref<64x32xbf16, #tpu.memory_space<vmem>>, vector<64x32xbf16>
    %cst = arith.constant dense<0.000000e+00> : vector<2x32xf32>
    %2 = tpu.matmul %0, %1, %cst {dimension_numbers = #tpu.dot_dimension_numbers<[1], [0], [0], [1], [0, 0, 1, 1], [], []>} : vector<2x64xbf16>, vector<64x32xbf16>, vector<2x32xf32> -> vector<2x32xf32>
    %c0_3 = arith.constant 0 : index
    %c0_4 = arith.constant 0 : index
    %3 = vector.load %arg3[%c0_3, %c0_4] : memref<1x32xf32, #tpu.memory_space<vmem>>, vector<1x32xf32>
    %4 = vector.broadcast %3 : vector<1x32xf32> to vector<2x32xf32>
    %5 = arith.addf %2, %4 : vector<2x32xf32>
    %cst_5 = arith.constant 0.000000e+00 : f32
    %6 = vector.broadcast %cst_5 : f32 to vector<2x32xf32>
    %7 = arith.maximumf %5, %6 : vector<2x32xf32>
    %8 = arith.truncf %7 : vector<2x32xf32> to vector<2x32xbf16>
    %c0_6 = arith.constant 0 : index
    %c0_7 = arith.constant 0 : index
    %9 = vector.load %arg4[%c0_6, %c0_7] : memref<32x96xbf16, #tpu.memory_space<vmem>>, vector<32x96xbf16>
    %cst_8 = arith.constant dense<0.000000e+00> : vector<2x96xf32>
    %10 = tpu.matmul %8, %9, %cst_8 {dimension_numbers = #tpu.dot_dimension_numbers<[1], [0], [0], [1], [0, 0, 1, 1], [], []>} : vector<2x32xbf16>, vector<32x96xbf16>, vector<2x96xf32> -> vector<2x96xf32>
    %c0_9 = arith.constant 0 : index
    %c0_10 = arith.constant 0 : index
    %11 = vector.load %arg5[%c0_9, %c0_10] : memref<1x96xf32, #tpu.memory_space<vmem>>, vector<1x96xf32>
    %12 = vector.broadcast %11 : vector<1x96xf32> to vector<2x96xf32>
    %13 = arith.addf %10, %12 : vector<2x96xf32>
    %cst_11 = arith.constant 0.000000e+00 : f32
    %14 = vector.broadcast %cst_11 : f32 to vector<2x96xf32>
    %15 = arith.maximumf %13, %14 : vector<2x96xf32>
    %c0_12 = arith.constant 0 : index
    %c0_13 = arith.constant 0 : index
    %16 = vector.load %arg6[%c0_12, %c0_13] : memref<8x96xbf16, #tpu.memory_space<vmem>>, vector<8x96xbf16>
    %17 = arith.truncf %15 : vector<2x96xf32> to vector<2x96xbf16>
    %cst_14 = arith.constant dense<0.000000e+00> : vector<8x2xf32>
    %18 = tpu.matmul %16, %17, %cst_14 {dimension_numbers = #tpu.dot_dimension_numbers<[1], [1], [0], [0], [0, 0, 1, 0], [], []>} : vector<8x96xbf16>, vector<2x96xbf16>, vector<8x2xf32> -> vector<8x2xf32>
    %c0_15 = arith.constant 0 : index
    %c0_16 = arith.constant 0 : index
    %19 = vector.load %arg7[%c0_15, %c0_16] : memref<8x1xf32, #tpu.memory_space<vmem>>, vector<8x1xf32>
    %20 = vector.broadcast %19 : vector<8x1xf32> to vector<8x2xf32>
    %21 = arith.addf %18, %20 : vector<8x2xf32>
    %c0_17 = arith.constant 0 : index
    %c0_18 = arith.constant 0 : index
    %22 = vector.load %arg8[%c0_17, %c0_18] : memref<8x2xf32, #tpu.memory_space<vmem>>, vector<8x2xf32>
    tpu.vector_store %arg8[%c0_17, %c0_18], %21 {strides = array<i32>} : memref<8x2xf32, #tpu.memory_space<vmem>>, vector<8x2xf32>,
    return
  }
  func.func @transform_0(%arg0: i32) -> (i32, i32) {
    %c0_i32 = arith.constant 0 : i32
    %c0_i32_0 = arith.constant 0 : i32
    return %arg0, %c0_i32 : i32, i32
  }
  func.func @transform_1(%arg0: i32) -> (i32, i32) {
    %c0_i32 = arith.constant 0 : i32
    %c0_i32_0 = arith.constant 0 : i32
    %c0_i32_1 = arith.constant 0 : i32
    return %c0_i32, %c0_i32_0 : i32, i32
  }
  func.func @transform_2(%arg0: i32) -> (i32, i32) {
    %c0_i32 = arith.constant 0 : i32
    %c0_i32_0 = arith.constant 0 : i32
    %c0_i32_1 = arith.constant 0 : i32
    return %c0_i32, %c0_i32_0 : i32, i32
  }
  func.func @transform_3(%arg0: i32) -> (i32, i32) {
    %c0_i32 = arith.constant 0 : i32
    %c0_i32_0 = arith.constant 0 : i32
    %c0_i32_1 = arith.constant 0 : i32
    return %c0_i32, %c0_i32_0 : i32, i32
  }
  func.func @transform_4(%arg0: i32) -> (i32, i32) {
    %c0_i32 = arith.constant 0 : i32
    %c0_i32_0 = arith.constant 0 : i32
    %c0_i32_1 = arith.constant 0 : i32
    return %c0_i32, %c0_i32_0 : i32, i32
  }
  func.func @transform_5(%arg0: i32) -> (i32, i32) {
    %c0_i32 = arith.constant 0 : i32
    %c0_i32_0 = arith.constant 0 : i32
    %c0_i32_1 = arith.constant 0 : i32
    return %c0_i32, %c0_i32_0 : i32, i32
  }
  func.func @transform_6(%arg0: i32) -> (i32, i32) {
    %c0_i32 = arith.constant 0 : i32
    %c0_i32_0 = arith.constant 0 : i32
    %c0_i32_1 = arith.constant 0 : i32
    return %c0_i32, %c0_i32_0 : i32, i32
  }
  func.func @transform_7(%arg0: i32) -> (i32, i32) {
    %c0_i32 = arith.constant 0 : i32
    %c0_i32_0 = arith.constant 0 : i32
    return %c0_i32, %arg0 : i32, i32
  }
}

</mosaic_0001>

<bundles_post_ra>
// kernel: combined_angle_prediction.1
= control target key start
LH: loop header
LB: loop body
LE: loop exit
PB: predicated region body
PF: predicated region fallthrough
CT: control target
= control target key end

     0   :  { %vm64_vm0 = vcmask 523264   ;;  %vm103_vm1 = vcmask 261120   ;;  %v192_v14 = vmov 0   ;;  %vm129_vm2 = vcmask 785408   ;;  %s269_s1 = inlined_call_operand.vmem [shape: bf16[64,32], index: 1, kind: input, shape index: {}]   ;;  %s270_s2 = inlined_call_operand.vmem [shape: f32[1,32], index: 2, kind: input, shape index: {}]   ;;  %s271_s0 = inlined_call_operand.vmem [shape: bf16[2,64], index: 0, kind: input, shape index: {}]   ;;  %s272_s4 = inlined_call_operand.vmem [shape: f32[1,96], index: 4, kind: input, shape index: {}]   ;;  %s273_s3 = inlined_call_operand.vmem [shape: bf16[32,96], index: 3, kind: input, shape index: {}]   ;;  %s274_s6 = inlined_call_operand.vmem [shape: f32[8,1], index: 6, kind: input, shape index: {}]   ;;  %s275_s5 = inlined_call_operand.vmem [shape: bf16[8,96], index: 5, kind: input, shape index: {}]   ;;  %s276_s7 = inlined_call_operand.vmem [shape: f32[8,2], index: 7, kind: output, shape index: {}]  }
   0x1   :  { %v185_v0 = vld [vmem:[%s269_s1 + $0x18] sm:$0xff]  ;;  %v184_v1 = vld [vmem:[%s269_s1 + $0x10] sm:$0xff]  ;;  %v183_v2 = vld [vmem:[%s269_s1 + $0x8] sm:$0xff]  ;;  %189 = vset.pattern.permute.xlu0 %v192_v14  ;;  %vm149_vm3 = vcmask 15360  }
   0x2   :  { %72 = vmatpush.bf16.msra.mxu0 %v185_v0  ;;  %v182_v3 = vld [vmem:[%s269_s1] sm:$0xff]  ;;  %v187_v5 = vld [vmem:[%s273_s3 + $0x8] sm:$0xff] }
   0x3   :  { %v27_v4 = vld [vmem:[%s271_s0] sm:$0x1]  ;;  %113 = vmatpush.bf16.msra.mxu1 %v187_v5 }
   0x4   :  { %v186_v6 = vld [vmem:[%s273_s3] sm:$0xff] }
   0x5   :  { %v190_v7 = vld [vmem:[%s270_s2] ss:$0 sm:$0xff] }
   0x6   :  { %73 = vmatpush.bf16.msra.mxu0 %v184_v1  ;;  %v123_v13 = vld [vmem:[%s274_s6] sm:$0xff] }
   0x7   :  { %114 = vmatpush.bf16.msra.mxu1 %v186_v6  ;;  %126 = vperm.xlu0 %189, %v123_v13   ;;  %v191_v15 = vld [vmem:[%s272_s4] ss:$0 sm:$0xff] }
   0x8   :  { %v121_v22 = vld [vmem:[%s275_s5] sm:$0xf] }
   0xa   :  { %74 = vmatpush.bf16.msra.mxu0 %v183_v2 }
   0xe   :  { %75 = vmatpush.bf16.msra.mxu0 %v182_v3 }
  0x11   :  { %171 = vmatmul.msk.bf16.vlgmr.msra.gmra.mxu0 %vm64_vm0, %v27_v4 }
  0x79   :  { %v127_v23 = vpop.permute.xlu0 %126 }
  0x8e   :  { %v77_v8 = vpop.f32.mrf.mxu0 }
  0x8f   :  { %v78_v9 = vadd.f32 %v190_v7, %v77_v8 }
  0x91   :  { %v81_v10 = vmax.f32 %v78_v9, 0.0 }
  0x93   :  { %v82_v11 = vpack.c.bf16 %v81_v10, %v81_v10 }
  0x95   :  { %180 = vmatmul.msk.bf16.vlgmr.msra.gmra.mxu1 %vm103_vm1, %v82_v11 }
  0x96   :  { %v79_v12 = vpop.f32.mrf.mxu0 }
 0x112   :  { %v116_v16 = vpop.f32.mrf.mxu1 }
 0x113   :  { %v117_v17 = vadd.f32 %v191_v15, %v116_v16 }
 0x115   :  { %v120_v18 = vmax.f32 %v117_v17, 0.0 }
 0x117   :  { %v122_v19 = vpack.c.bf16 %v120_v18, %v120_v18 }
 0x119   :  { %v134_v20 = vsel %vm129_vm2, %v122_v19, 0 }
 0x11a   :  { %v118_v21 = vpop.f32.mrf.mxu1  ;;  %143 = vmatpush.bf16.xpose.msra.mxu2 %v134_v20 }
 0x121   :  { %181 = vmatmul.msk.bf16.vlgmr.msra.gmra.mxu2 %vm129_vm2, %v121_v22 }
 0x1a4   :  { %v145_v24 = vpop.f32.mrf.mxu2 }
 0x1a5   :  { %v146_v25 = vadd.f32 %v145_v24, %v127_v23 }
 0x1a7   :  { %150 = vst.msk [vmem:[%s276_s7] sm:$0xff] %vm149_vm3, %v146_v25 }
 0x1ac   :  { %v147_v26 = vpop.f32.mrf.mxu2 }

</bundles_post_ra>
